<compile_context>
chip_gen: v6e
topology: v6e:2x2x1
jax: 0.10.0
libtpu: 0.0.40
codegen_flags: <defaults>
</compile_context>

<pallas_src>
import functools

import jax
import jax.numpy as jnp
from jax.experimental import pallas as pl
from jax.experimental.pallas import tpu as pltpu

_PREC = jax.lax.Precision.HIGHEST


def _round_up(x, m):
    return ((x + m - 1) // m) * m


def relu_drift_kernel(x_ref, w1_ref, w_ref, b_ref, o_ref):
    # x_ref : [d, tb]     batch on lanes, raw (un-padded) feature rows on sublanes
    # w1_ref: [n, d]      fc1 weight (PyTorch (out, in) layout)
    # w_ref : [4, n, n]   fc2, fc3, fc4 and zero-padded fc5
    # b_ref : [5, n, 1]   b1..b4 and zero-padded b5
    # o_ref : [1, tb]     lane-dense output block
    x = x_ref[...]
    w1 = w1_ref[...]
    d = x.shape[0]

    # fc1: K = d (=3) is too skinny to be worth an MXU push -> d broadcast-FMAs.
    h = w1[:, 0:1] * x[0:1, :]
    for j in range(1, d):
        h = h + w1[:, j:j + 1] * x[j:j + 1, :]
    h = jnp.maximum(h + b_ref[0], 0.0)

    # fc2..fc4 on the MXU.
    for layer in range(3):
        h = jnp.dot(w_ref[layer], h,
                    preferred_element_type=jnp.float32, precision=_PREC)
        h = jnp.maximum(h + b_ref[layer + 1], 0.0)

    # fc5: single output unit -> only row 0 of the last slab entry.
    out = jnp.dot(w_ref[3, :1, :], h,
                  preferred_element_type=jnp.float32, precision=_PREC)
    o_ref[...] = (out + b_ref[4, :1, :]).astype(o_ref.dtype)


def pack_params(params):
    """Pack the ten PyTorch-style tensors into three kernel operands (call once)."""
    n, d = params["w1"].shape
    w1 = params["w1"].astype(jnp.float32)                            # (n, d)
    w5_pad = jnp.zeros((n, n), jnp.float32).at[:1, :].set(params["w5"])
    w = jnp.stack([params["w2"], params["w3"], params["w4"], w5_pad]
                  ).astype(jnp.float32)                              # (4, n, n)
    b = jnp.zeros((5, n, 1), jnp.float32)
    b = b.at[0, :, 0].set(params["b1"])
    b = b.at[1, :, 0].set(params["b2"])
    b = b.at[2, :, 0].set(params["b3"])
    b = b.at[3, :, 0].set(params["b4"])
    b = b.at[4, 0, 0].set(params["b5"][0])
    return dict(w1=w1, w=w, b=b)


@functools.partial(jax.jit, static_argnames=("tm",))
def relu_drift(x, packed, *, tm=131072):
    """x: [B, d] float32 (PyTorch layout). packed: pack_params(...). Returns [B, 1]."""
    B, d = x.shape
    n = packed["w1"].shape[0]
    assert packed["w1"].shape[1] == d
    assert tm % 128 == 0

    # Lane-align the batch, then pick tile/grid:
    #   * a tile never exceeds tm lanes (VMEM-safe on v5e/v6e/v7x),
    #   * ragged batches are padded up to grid*tb (never a single giant step),
    #   * medium/large batches get >= 2 steps so the "parallel" grid axis can
    #     be split across v7x's two TensorCores.
    B_pad = _round_up(B, 128)
    steps = pl.cdiv(B_pad, tm)
    if steps == 1 and B_pad >= 1024:
        steps = 2
    tb = _round_up(pl.cdiv(B_pad, steps), 128)
    steps = pl.cdiv(B_pad, tb)
    B_pad = steps * tb

    # Batch-on-lanes, no feature padding. Extra batch columns are zeros and
    # their outputs are dropped below.
    xt = jnp.zeros((d, B_pad), jnp.float32).at[:, :B].set(x.T.astype(jnp.float32))

    out = pl.pallas_call(
        relu_drift_kernel,
        out_shape=jax.ShapeDtypeStruct((1, B_pad), jnp.float32),
        grid_spec=pl.GridSpec(
            grid=(steps,),
            in_specs=[
                pl.BlockSpec((d, tb), lambda i: (0, i)),         # x tile
                pl.BlockSpec((n, d), lambda i: (0, 0)),          # fc1 weight
                pl.BlockSpec((4, n, n), lambda i: (0, 0, 0)),    # fc2..fc5 slab
                pl.BlockSpec((5, n, 1), lambda i: (0, 0, 0)),    # bias slab
            ],
            out_specs=pl.BlockSpec((1, tb), lambda i: (0, i)),
        ),
        compiler_params=pltpu.CompilerParams(
            dimension_semantics=("parallel",),
            vmem_limit_bytes=32 * 1024 * 1024),
    )(xt, packed["w1"], packed["w"], packed["b"])
    return out[:, :B].T                                          # [B, 1]


def init_params(key, d=3, n=8):
    """Deterministic PyTorch-style init. Weights stored as (out, in)."""
    ks = jax.random.split(key, 10)

    def lin(kw, kb, fan_in, fan_out):
        bound = 1.0 / jnp.sqrt(jnp.float32(fan_in))
        wgt = jax.random.uniform(kw, (fan_out, fan_in), jnp.float32, -bound, bound)
        bias = jax.random.uniform(kb, (fan_out,), jnp.float32, -bound, bound)
        return wgt, bias

    w1, b1 = lin(ks[0], ks[1], d, n)
    w2, b2 = lin(ks[2], ks[3], n, n)
    w3, b3 = lin(ks[4], ks[5], n, n)
    w4, b4 = lin(ks[6], ks[7], n, n)
    w5, b5 = lin(ks[8], ks[9], n, 1)
    return dict(w1=w1, b1=b1, w2=w2, b2=b2, w3=w3, b3=b3,
                w4=w4, b4=b4, w5=w5, b5=b5)


def relu_drift_ref(x, p):
    h = jnp.maximum(jnp.dot(x, p["w1"].T, precision=_PREC) + p["b1"], 0.0)
    h = jnp.maximum(jnp.dot(h, p["w2"].T, precision=_PREC) + p["b2"], 0.0)
    h = jnp.maximum(jnp.dot(h, p["w3"].T, precision=_PREC) + p["b3"], 0.0)
    h = jnp.maximum(jnp.dot(h, p["w4"].T, precision=_PREC) + p["b4"], 0.0)
    return jnp.dot(h, p["w5"].T, precision=_PREC) + p["b5"]


if __name__ == "__main__":
    key = jax.random.PRNGKey(0)
    k_x, k_p = jax.random.split(key)

    d, n, B = 3, 8, 64
    x = jax.random.normal(k_x, (B, d), dtype=jnp.float32)
    params = init_params(k_p, d=d, n=n)
    packed = pack_params(params)          # hoisted: pack once, reuse per call

    out = relu_drift(x, packed)
    out = jax.block_until_ready(out)

    ref = relu_drift_ref(x, params)
    assert out.shape == (B, 1)
    assert jnp.allclose(out, ref, atol=1e-5, rtol=1e-5)

    print("KERNEL_OK")
</pallas_src>

<mosaic_0001>
module attributes {stable_mosaic.version = 11 : i64} {
  func.func @relu_drift_kernel(%arg0: i32, %arg1: memref<3x128xf32, #tpu.memory_space<vmem>>, %arg2: memref<8x3xf32, #tpu.memory_space<vmem>>, %arg3: memref<4x8x8xf32, #tpu.memory_space<vmem>>, %arg4: memref<5x8x1xf32, #tpu.memory_space<vmem>>, %arg5: memref<1x128xf32, #tpu.memory_space<vmem>>) attributes {dimension_semantics = [#tpu.dimension_semantics<parallel>], iteration_bounds = array<i64: 1>, scalar_prefetch = 0 : i64, scratch_operands = 0 : i64, tpu.core_type = #tpu.core_type<tc>, window_params = [{transform_indices = @transform_0, window_bounds = array<i64: 3, 128>}, {pipeline_mode = #tpu.pipeline_mode<synchronous>, transform_indices = @transform_1, window_bounds = array<i64: 8, 3>}, {pipeline_mode = #tpu.pipeline_mode<synchronous>, transform_indices = @transform_2, window_bounds = array<i64: 4, 8, 8>}, {pipeline_mode = #tpu.pipeline_mode<synchronous>, transform_indices = @transform_3, window_bounds = array<i64: 5, 8, 1>}, {transform_indices = @transform_4, window_bounds = array<i64: 1, 128>}]} {
    %c0 = arith.constant 0 : index
    %c0_0 = arith.constant 0 : index
    %0 = vector.load %arg1[%c0, %c0_0] : memref<3x128xf32, #tpu.memory_space<vmem>>, vector<3x128xf32>
    %c0_1 = arith.constant 0 : index
    %c0_2 = arith.constant 0 : index
    %1 = vector.load %arg2[%c0_1, %c0_2] : memref<8x3xf32, #tpu.memory_space<vmem>>, vector<8x3xf32>
    %2 = vector.extract_strided_slice %1 {offsets = [0, 0], sizes = [8, 1], strides = [1, 1]} : vector<8x3xf32> to vector<8x1xf32>
    %3 = vector.extract_strided_slice %0 {offsets = [0, 0], sizes = [1, 128], strides = [1, 1]} : vector<3x128xf32> to vector<1x128xf32>
    %4 = vector.broadcast %2 : vector<8x1xf32> to vector<8x128xf32>
    %5 = vector.broadcast %3 : vector<1x128xf32> to vector<8x128xf32>
    %6 = arith.mulf %4, %5 : vector<8x128xf32>
    %7 = vector.extract_strided_slice %1 {offsets = [0, 1], sizes = [8, 1], strides = [1, 1]} : vector<8x3xf32> to vector<8x1xf32>
    %8 = vector.extract_strided_slice %0 {offsets = [1, 0], sizes = [1, 128], strides = [1, 1]} : vector<3x128xf32> to vector<1x128xf32>
    %9 = vector.broadcast %7 : vector<8x1xf32> to vector<8x128xf32>
    %10 = vector.broadcast %8 : vector<1x128xf32> to vector<8x128xf32>
    %11 = arith.mulf %9, %10 : vector<8x128xf32>
    %12 = arith.addf %6, %11 : vector<8x128xf32>
    %13 = vector.extract_strided_slice %1 {offsets = [0, 2], sizes = [8, 1], strides = [1, 1]} : vector<8x3xf32> to vector<8x1xf32>
    %14 = vector.extract_strided_slice %0 {offsets = [2, 0], sizes = [1, 128], strides = [1, 1]} : vector<3x128xf32> to vector<1x128xf32>
    %15 = vector.broadcast %13 : vector<8x1xf32> to vector<8x128xf32>
    %16 = vector.broadcast %14 : vector<1x128xf32> to vector<8x128xf32>
    %17 = arith.mulf %15, %16 : vector<8x128xf32>
    %18 = arith.addf %12, %17 : vector<8x128xf32>
    %c0_3 = arith.constant 0 : index
    %c0_4 = arith.constant 0 : index
    %c0_5 = arith.constant 0 : index
    %19 = vector.load %arg4[%c0_3, %c0_4, %c0_5] : memref<5x8x1xf32, #tpu.memory_space<vmem>>, vector<1x8x1xf32>
    %20 = vector.shape_cast %19 : vector<1x8x1xf32> to vector<8x1xf32>
    %21 = vector.broadcast %20 : vector<8x1xf32> to vector<8x128xf32>
    %22 = arith.addf %18, %21 : vector<8x128xf32>
    %cst = arith.constant 0.000000e+00 : f32
    %23 = vector.broadcast %cst : f32 to vector<8x128xf32>
    %24 = arith.maximumf %22, %23 : vector<8x128xf32>
    %c0_6 = arith.constant 0 : index
    %c0_7 = arith.constant 0 : index
    %c0_8 = arith.constant 0 : index
    %25 = vector.load %arg3[%c0_6, %c0_7, %c0_8] : memref<4x8x8xf32, #tpu.memory_space<vmem>>, vector<1x8x8xf32>
    %26 = vector.shape_cast %25 : vector<1x8x8xf32> to vector<8x8xf32>
    %cst_9 = arith.constant dense<0.000000e+00> : vector<8x128xf32>
    %27 = tpu.matmul %26, %24, %cst_9 {dimension_numbers = #tpu.dot_dimension_numbers<[1], [0], [0], [1], [0, 0, 1, 1], [], []>, precision = #tpu.contract_precision<fp32>} : vector<8x8xf32>, vector<8x128xf32>, vector<8x128xf32> -> vector<8x128xf32>
    %c1 = arith.constant 1 : index
    %c0_10 = arith.constant 0 : index
    %c0_11 = arith.constant 0 : index
    %28 = vector.load %arg4[%c1, %c0_10, %c0_11] : memref<5x8x1xf32, #tpu.memory_space<vmem>>, vector<1x8x1xf32>
    %29 = vector.shape_cast %28 : vector<1x8x1xf32> to vector<8x1xf32>
    %30 = vector.broadcast %29 : vector<8x1xf32> to vector<8x128xf32>
    %31 = arith.addf %27, %30 : vector<8x128xf32>
    %cst_12 = arith.constant 0.000000e+00 : f32
    %32 = vector.broadcast %cst_12 : f32 to vector<8x128xf32>
    %33 = arith.maximumf %31, %32 : vector<8x128xf32>
    %c1_13 = arith.constant 1 : index
    %c0_14 = arith.constant 0 : index
    %c0_15 = arith.constant 0 : index
    %34 = vector.load %arg3[%c1_13, %c0_14, %c0_15] : memref<4x8x8xf32, #tpu.memory_space<vmem>>, vector<1x8x8xf32>
    %35 = vector.shape_cast %34 : vector<1x8x8xf32> to vector<8x8xf32>
    %cst_16 = arith.constant dense<0.000000e+00> : vector<8x128xf32>
    %36 = tpu.matmul %35, %33, %cst_16 {dimension_numbers = #tpu.dot_dimension_numbers<[1], [0], [0], [1], [0, 0, 1, 1], [], []>, precision = #tpu.contract_precision<fp32>} : vector<8x8xf32>, vector<8x128xf32>, vector<8x128xf32> -> vector<8x128xf32>
    %c2 = arith.constant 2 : index
    %c0_17 = arith.constant 0 : index
    %c0_18 = arith.constant 0 : index
    %37 = vector.load %arg4[%c2, %c0_17, %c0_18] : memref<5x8x1xf32, #tpu.memory_space<vmem>>, vector<1x8x1xf32>
    %38 = vector.shape_cast %37 : vector<1x8x1xf32> to vector<8x1xf32>
    %39 = vector.broadcast %38 : vector<8x1xf32> to vector<8x128xf32>
    %40 = arith.addf %36, %39 : vector<8x128xf32>
    %cst_19 = arith.constant 0.000000e+00 : f32
    %41 = vector.broadcast %cst_19 : f32 to vector<8x128xf32>
    %42 = arith.maximumf %40, %41 : vector<8x128xf32>
    %c2_20 = arith.constant 2 : index
    %c0_21 = arith.constant 0 : index
    %c0_22 = arith.constant 0 : index
    %43 = vector.load %arg3[%c2_20, %c0_21, %c0_22] : memref<4x8x8xf32, #tpu.memory_space<vmem>>, vector<1x8x8xf32>
    %44 = vector.shape_cast %43 : vector<1x8x8xf32> to vector<8x8xf32>
    %cst_23 = arith.constant dense<0.000000e+00> : vector<8x128xf32>
    %45 = tpu.matmul %44, %42, %cst_23 {dimension_numbers = #tpu.dot_dimension_numbers<[1], [0], [0], [1], [0, 0, 1, 1], [], []>, precision = #tpu.contract_precision<fp32>} : vector<8x8xf32>, vector<8x128xf32>, vector<8x128xf32> -> vector<8x128xf32>
    %c3 = arith.constant 3 : index
    %c0_24 = arith.constant 0 : index
    %c0_25 = arith.constant 0 : index
    %46 = vector.load %arg4[%c3, %c0_24, %c0_25] : memref<5x8x1xf32, #tpu.memory_space<vmem>>, vector<1x8x1xf32>
    %47 = vector.shape_cast %46 : vector<1x8x1xf32> to vector<8x1xf32>
    %48 = vector.broadcast %47 : vector<8x1xf32> to vector<8x128xf32>
    %49 = arith.addf %45, %48 : vector<8x128xf32>
    %cst_26 = arith.constant 0.000000e+00 : f32
    %50 = vector.broadcast %cst_26 : f32 to vector<8x128xf32>
    %51 = arith.maximumf %49, %50 : vector<8x128xf32>
    %c3_27 = arith.constant 3 : index
    %c0_28 = arith.constant 0 : index
    %c0_29 = arith.constant 0 : index
    %52 = vector.load %arg3[%c3_27, %c0_28, %c0_29] : memref<4x8x8xf32, #tpu.memory_space<vmem>>, vector<1x1x8xf32>
    %53 = vector.shape_cast %52 : vector<1x1x8xf32> to vector<1x8xf32>
    %cst_30 = arith.constant dense<0.000000e+00> : vector<1x128xf32>
    %54 = tpu.matmul %53, %51, %cst_30 {dimension_numbers = #tpu.dot_dimension_numbers<[1], [0], [0], [1], [0, 0, 1, 1], [], []>, precision = #tpu.contract_precision<fp32>} : vector<1x8xf32>, vector<8x128xf32>, vector<1x128xf32> -> vector<1x128xf32>
    %c4 = arith.constant 4 : index
    %c0_31 = arith.constant 0 : index
    %c0_32 = arith.constant 0 : index
    %55 = vector.load %arg4[%c4, %c0_31, %c0_32] : memref<5x8x1xf32, #tpu.memory_space<vmem>>, vector<1x1x1xf32>
    %56 = vector.shape_cast %55 : vector<1x1x1xf32> to vector<1x1xf32>
    %57 = vector.broadcast %56 : vector<1x1xf32> to vector<1x128xf32>
    %58 = arith.addf %54, %57 : vector<1x128xf32>
    %c0_33 = arith.constant 0 : index
    %c0_34 = arith.constant 0 : index
    %59 = vector.load %arg5[%c0_33, %c0_34] : memref<1x128xf32, #tpu.memory_space<vmem>>, vector<1x128xf32>
    tpu.vector_store %arg5[%c0_33, %c0_34], %58 {strides = array<i32>} : memref<1x128xf32, #tpu.memory_space<vmem>>, vector<1x128xf32>,
    return
  }
  func.func @transform_0(%arg0: i32) -> (i32, i32) {
    %c0_i32 = arith.constant 0 : i32
    %c0_i32_0 = arith.constant 0 : i32
    return %c0_i32, %arg0 : i32, i32
  }
  func.func @transform_1(%arg0: i32) -> (i32, i32) {
    %c0_i32 = arith.constant 0 : i32
    %c0_i32_0 = arith.constant 0 : i32
    %c0_i32_1 = arith.constant 0 : i32
    return %c0_i32, %c0_i32_0 : i32, i32
  }
  func.func @transform_2(%arg0: i32) -> (i32, i32, i32) {
    %c0_i32 = arith.constant 0 : i32
    %c0_i32_0 = arith.constant 0 : i32
    %c0_i32_1 = arith.constant 0 : i32
    %c0_i32_2 = arith.constant 0 : i32
    return %c0_i32, %c0_i32_0, %c0_i32_1 : i32, i32, i32
  }
  func.func @transform_3(%arg0: i32) -> (i32, i32, i32) {
    %c0_i32 = arith.constant 0 : i32
    %c0_i32_0 = arith.constant 0 : i32
    %c0_i32_1 = arith.constant 0 : i32
    %c0_i32_2 = arith.constant 0 : i32
    return %c0_i32, %c0_i32_0, %c0_i32_1 : i32, i32, i32
  }
  func.func @transform_4(%arg0: i32) -> (i32, i32) {
    %c0_i32 = arith.constant 0 : i32
    %c0_i32_0 = arith.constant 0 : i32
    return %c0_i32, %arg0 : i32, i32
  }
}

</mosaic_0001>

<bundles_post_ra>
// kernel: relu_drift.1
= control target key start
LH: loop header
LB: loop body
LE: loop exit
PB: predicated region body
PF: predicated region fallthrough
CT: control target
= control target key end

     0   :  { %v2082_v0 = vmov 2   ;;  %v2083_v1 = vmov 0   ;;  %v2084_v4 = vmov 1   ;;  %v2085_v7 = vmov 0.0   ;;  %s2224_s1 = inlined_call_operand.vmem [shape: f32[8,3], index: 1, kind: input, shape index: {}]   ;;  %s2225_s3 = inlined_call_operand.vmem [shape: f32[5,8,1], index: 3, kind: input, shape index: {}]   ;;  %s2226_s2 = inlined_call_operand.vmem [shape: f32[4,8,8], index: 2, kind: input, shape index: {}]   ;;  %s2227_s0 = inlined_call_operand.vmem [shape: f32[3,128], index: 0, kind: input, shape index: {}]   ;;  %s2228_s4 = inlined_call_operand.vmem [shape: f32[1,128], index: 4, kind: output, shape index: {}]  }
   0x1   :  { %2079 = vset.pattern.permute.xlu1 %v2082_v0  ;;  %2077 = vset.pattern.permute.xlu0 %v2083_v1  ;;  %v18_v2 = vld [vmem:[%s2224_s1] sm:$0xff]  ;;  %v1897_v5 = vld [vmem:[%s2225_s3 + $0x8] sm:$0xff]  ;;  %v1901_v6 = vld [vmem:[%s2225_s3 + $0x18] sm:$0xff]  ;;  %vm2086_vm0 = vmmov 0   ;;  %v24_v9 = vlaneseq  ;;  %vm65_vm1 = vcmask 64512  }
   0x2   :  { %40 = vperm.xlu1 %2079, %v18_v2   ;;  %21 = vperm.xlu0 %2077, %v18_v2   ;;  %v49_v3 = vld [vmem:[%s2225_s3] sm:$0xff]  ;;  %v1899_v41 = vld [vmem:[%s2225_s3 + $0x10] sm:$0xff]  ;;  %v1898_v42 = vld [vmem:[%s2226_s2 + $0x8] sm:$0xff] }
   0x3   :  { %1952 = vmatprep.subr.mxu0 %v2085_v7  ;;  %1957 = vmatprep.subr.mxu1 %v2085_v7  ;;  %v1903_v8 = vld [vmem:[%s2225_s3 + $0x20] sm:$0x1]  ;;  %v25_v11 = vshrl.u32 %v24_v9, 7  ;;  %v526_v44 = vsel %vm65_vm1, %v1898_v42, 0 }
   0x4   :  { %1954 = vmatprep.mubr.msk.f32.mxu0 %vm2086_vm0, %v2085_v7  ;;  %1959 = vmatprep.mubr.msk.f32.mxu1 %vm2086_vm0, %v2085_v7  ;;  %v57_v10 = vld [vmem:[%s2226_s2] sm:$0xff]  ;;  %v594_v47 = vand.u32 4294901760, %v526_v44 }
   0x5   :  { %v67_v12 = vsel %vm65_vm1, %v57_v10, 0  ;;  %v26_v13 = vsub.s32 0, %v25_v11  ;;  %v45_v14 = vsub.s32 2, %v25_v11  ;;  %v35_v15 = vsub.s32 1, %v25_v11  ;;  %v17_v16 = vld [vmem:[%s2227_s0] sm:$0x7] }
   0x6   :  { %2080 = vset.pattern.permute.xlu1 %v2083_v1  ;;  %2078 = vset.pattern.permute.xlu0 %v2084_v4  ;;  %v135_v17 = vand.u32 4294901760, %v67_v12  ;;  %v595_v52 = vsub.f32 %v526_v44, %v594_v47  ;;  %v1900_v11 = vld [vmem:[%s2226_s2 + $0x10] sm:$0xff] }
   0x7   :  { %52 = vperm.xlu1 %2080, %v49_v3   ;;  %30 = vperm.xlu0 %2078, %v18_v2   ;;  %v27_v19 = vrot.slane %v17_v16, %v26_v13  ;;  %v46_v20 = vrot.slane %v17_v16, %v45_v14  ;;  %v36_v21 = vrot.slane %v17_v16, %v35_v15  ;;  %v985_v13 = vsel %vm65_vm1, %v1900_v11, 0 }
   0x8   :  { %v136_v22 = vsub.f32 %v67_v12, %v135_v17  ;;  %v596_v59 = vand.u32 4294901760, %v595_v52 }
   0xa   :  { %v137_v28 = vand.u32 4294901760, %v136_v22  ;;  %v597_v0 = vsub.f32 %v595_v52, %v596_v59 }
   0xb   :  { %62 = vperm.xlu1 %2080, %v1897_v5   ;;  %2081 = vset.pattern.permute.xlu0 %v2083_v1 }
   0xc   :  { %v138_v32 = vsub.f32 %v136_v22, %v137_v28  ;;  %522 = vperm.xlu0 %2081, %v1899_v41   ;;  %v598_v4 = vand.u32 4294901760, %v597_v0 }
   0xe   :  { %v139_v35 = vand.u32 4294901760, %v138_v32 }
   0xf   :  { %981 = vperm.xlu1 %2080, %v1901_v6  }
  0x13   :  { %1440 = vperm.xlu1 %2080, %v1903_v8  }
  0x7d   :  { %v22_v18 = vpop.permute.xlu0 %21  ;;  %v41_v23 = vpop.permute.xlu1 %40 }
  0x7e   :  { %v28_v25 = vmul.f32 %v27_v19, %v22_v18  ;;  %v47_v26 = vmul.f32 %v46_v20, %v41_v23 }
  0x82   :  { %v31_v24 = vpop.permute.xlu0 %30  ;;  %v53_v31 = vpop.permute.xlu1 %52 }
  0x83   :  { %v37_v27 = vmul.f32 %v36_v21, %v31_v24 }
  0x85   :  { %v38_v29 = vadd.f32 %v37_v27, %v28_v25 }
  0x86   :  { %v63_v48 = vpop.permute.xlu1 %62 }
  0x87   :  { %v48_v30 = vadd.f32 %v47_v26, %v38_v29  ;;  %v523_v14 = vpop.permute.xlu0 %522 }
  0x89   :  { %v55_v33 = vadd.f32 %v53_v31, %v48_v30 }
  0x8b   :  { %v56_v34 = vmax.f32 %v55_v33, 0.0 }
  0x8d   :  { %v100_v36 = vand.u32 4294901760, %v56_v34 }
  0x8f   :  { %1953 = vmatpush3.msra.mxu0 %v100_v36  ;;  %v177_v37 = vsub.f32 %v56_v34, %v100_v36 }
  0x90   :  { %1955 = vmatmul.mubr.f32.vlgmr.msra.gmra.mxu0 %v139_v35  ;;  %1962 = vmatprep.subr.mxu0 %v2085_v7 }
  0x91   :  { %1963 = vmatpush3.msra.mxu0 %v177_v37  ;;  %1964 = vmatprep.mubr.msk.f32.mxu0 %vm2086_vm0, %v2085_v7  ;;  %v178_v38 = vand.u32 4294901760, %v177_v37 }
  0x92   :  { %1972 = vmatprep.subr.mxu0 %v2085_v7 }
  0x93   :  { %v179_v39 = vsub.f32 %v177_v37, %v178_v38 }
  0x94   :  { %1965 = vmatmul.mubr.f32.vlgmr.msra.gmra.mxu0 %v136_v22 }
  0x95   :  { %1973 = vmatpush3.msra.mxu0 %v178_v38  ;;  %v180_v40 = vand.u32 4294901760, %v179_v39  ;;  %1974 = vmatprep.mubr.msk.f32.mxu0 %vm2086_vm0, %v2085_v7 }
  0x96   :  { %1982 = vmatprep.subr.mxu0 %v2085_v7 }
  0x97   :  { %1958 = vmatpush3.msra.mxu1 %v180_v40 }
  0x98   :  { %1960 = vmatmul.mubr.f32.vlgmr.msra.gmra.mxu1 %v135_v17  ;;  %1967 = vmatprep.subr.mxu1 %v2085_v7 }
  0x99   :  { %1968 = vmatpush3.msra.mxu1 %v100_v36  ;;  %1969 = vmatprep.mubr.msk.f32.mxu1 %vm2086_vm0, %v2085_v7 }
  0x9a   :  { %1977 = vmatprep.subr.mxu1 %v2085_v7  ;;  %1975 = vmatmul.mubr.f32.vlgmr.msra.gmra.mxu0 %v135_v17 }
  0x9b   :  { %1984 = vmatprep.mubr.msk.f32.mxu0 %vm2086_vm0, %v2085_v7 }
  0x9c   :  { %1970 = vmatmul.mubr.f32.vlgmr.msra.gmra.mxu1 %v137_v28 }
  0x9d   :  { %1978 = vmatpush3.msra.mxu1 %v100_v36  ;;  %1979 = vmatprep.mubr.msk.f32.mxu1 %vm2086_vm0, %v2085_v7 }
  0x9e   :  { %1987 = vmatprep.subr.mxu1 %v2085_v7 }
  0xa0   :  { %1980 = vmatmul.mubr.f32.vlgmr.msra.gmra.mxu1 %v135_v17  ;;  %v1053_v17 = vand.u32 4294901760, %v985_v13 }
  0xa1   :  { %1989 = vmatprep.mubr.msk.f32.mxu1 %vm2086_vm0, %v2085_v7 }
  0xa2   :  { %v1054_v21 = vsub.f32 %v985_v13, %v1053_v17 }
  0xa4   :  { %v1055_v28 = vand.u32 4294901760, %v1054_v21 }
  0xa6   :  { %v1056_v33 = vsub.f32 %v1054_v21, %v1055_v28 }
  0xa8   :  { %v1057_v37 = vand.u32 4294901760, %v1056_v33 }
 0x150   :  { %v141_v43 = vpop.f32.mrf.mxu0 }
 0x151   :  { %v142_v50 = vadd.f32 %v141_v43, %v63_v48  ;;  %v1902_v43 = vld [vmem:[%s2226_s2 + $0x18] sm:$0x1] }
 0x152   :  { %v1956_v45 = vpop.f32.mrf.mxu0 }
 0x153   :  { %v1444_v45 = vsel %vm65_vm1, %v1902_v43, 0 }
 0x154   :  { %v291_v46 = vpop.f32.mrf.mxu0  ;;  %v1512_v48 = vand.u32 4294901760, %v1444_v45 }
 0x156   :  { %v1966_v49 = vpop.f32.mrf.mxu0 }
 0x157   :  { %v982_v49 = vpop.permute.xlu1 %981 }
 0x158   :  { %v217_v51 = vpop.f32.mrf.mxu1 }
 0x159   :  { %v218_v53 = vadd.f32 %v217_v51, %v142_v50 }
 0x15a   :  { %v1961_v54 = vpop.f32.mrf.mxu1  ;;  %v439_v55 = vpop.f32.mrf.mxu0 }
 0x15b   :  { %v292_v56 = vadd.f32 %v291_v46, %v218_v53  ;;  %v1513_v53 = vsub.f32 %v1444_v45, %v1512_v48 }
 0x15c   :  { %v365_v57 = vpop.f32.mrf.mxu1  ;;  %v1976_v58 = vpop.f32.mrf.mxu0 }
 0x15d   :  { %v366_v60 = vadd.f32 %v365_v57, %v292_v56 }
 0x15e   :  { %v1971_v61 = vpop.f32.mrf.mxu1 }
 0x15f   :  { %v440_v62 = vadd.f32 %v439_v55, %v366_v60  ;;  %v1514_v60 = vand.u32 4294901760, %v1513_v53 }
 0x160   :  { %v511_v63 = vpop.f32.mrf.mxu1 }
 0x161   :  { %v512_v1 = vadd.f32 %v511_v63, %v440_v62 }
 0x162   :  { %v1981_v2 = vpop.f32.mrf.mxu1 }
 0x163   :  { %v515_v3 = vmax.f32 %v512_v1, 0.0  ;;  %v1515_v1 = vsub.f32 %v1513_v53, %v1514_v60 }
 0x165   :  { %v559_v5 = vand.u32 4294901760, %v515_v3 }
 0x167   :  { %v636_v6 = vsub.f32 %v515_v3, %v559_v5  ;;  %1983 = vmatpush3.msra.mxu0 %v559_v5 }
 0x168   :  { %1985 = vmatmul.mubr.f32.vlgmr.msra.gmra.mxu0 %v598_v4  ;;  %1992 = vmatprep.subr.mxu0 %v2085_v7 }
 0x169   :  { %v637_v8 = vand.u32 4294901760, %v636_v6  ;;  %1993 = vmatpush3.msra.mxu0 %v636_v6  ;;  %1994 = vmatprep.mubr.msk.f32.mxu0 %vm2086_vm0, %v2085_v7 }
 0x16a   :  { %2002 = vmatprep.subr.mxu0 %v2085_v7 }
 0x16b   :  { %v638_v9 = vsub.f32 %v636_v6, %v637_v8 }
 0x16c   :  { %1995 = vmatmul.mubr.f32.vlgmr.msra.gmra.mxu0 %v595_v52 }
 0x16d   :  { %2003 = vmatpush3.msra.mxu0 %v637_v8  ;;  %v639_v10 = vand.u32 4294901760, %v638_v9  ;;  %2004 = vmatprep.mubr.msk.f32.mxu0 %vm2086_vm0, %v2085_v7 }
 0x16e   :  { %2012 = vmatprep.subr.mxu0 %v2085_v7 }
 0x16f   :  { %1988 = vmatpush3.msra.mxu1 %v639_v10 }
 0x170   :  { %1990 = vmatmul.mubr.f32.vlgmr.msra.gmra.mxu1 %v594_v47  ;;  %1997 = vmatprep.subr.mxu1 %v2085_v7 }
 0x171   :  { %1998 = vmatpush3.msra.mxu1 %v559_v5  ;;  %1999 = vmatprep.mubr.msk.f32.mxu1 %vm2086_vm0, %v2085_v7 }
 0x172   :  { %2007 = vmatprep.subr.mxu1 %v2085_v7  ;;  %2005 = vmatmul.mubr.f32.vlgmr.msra.gmra.mxu0 %v594_v47 }
 0x173   :  { %2014 = vmatprep.mubr.msk.f32.mxu0 %vm2086_vm0, %v2085_v7 }
 0x174   :  { %2000 = vmatmul.mubr.f32.vlgmr.msra.gmra.mxu1 %v596_v59 }
 0x175   :  { %2008 = vmatpush3.msra.mxu1 %v559_v5  ;;  %2009 = vmatprep.mubr.msk.f32.mxu1 %vm2086_vm0, %v2085_v7  ;;  %v1516_v5 = vand.u32 4294901760, %v1515_v1 }
 0x176   :  { %2017 = vmatprep.subr.mxu1 %v2085_v7 }
 0x178   :  { %2010 = vmatmul.mubr.f32.vlgmr.msra.gmra.mxu1 %v594_v47 }
 0x179   :  { %2019 = vmatprep.mubr.msk.f32.mxu1 %vm2086_vm0, %v2085_v7 }
 0x228   :  { %v600_v12 = vpop.f32.mrf.mxu0 }
 0x229   :  { %v601_v18 = vadd.f32 %v600_v12, %v523_v14 }
 0x22a   :  { %v1986_v15 = vpop.f32.mrf.mxu0 }
 0x22b   :  { %v1441_v15 = vpop.permute.xlu1 %1440 }
 0x22c   :  { %v750_v16 = vpop.f32.mrf.mxu0 }
 0x22e   :  { %v1996_v19 = vpop.f32.mrf.mxu0 }
 0x230   :  { %v676_v20 = vpop.f32.mrf.mxu1 }
 0x231   :  { %v677_v22 = vadd.f32 %v676_v20, %v601_v18 }
 0x232   :  { %v1991_v23 = vpop.f32.mrf.mxu1  ;;  %v898_v24 = vpop.f32.mrf.mxu0 }
 0x233   :  { %v751_v25 = vadd.f32 %v750_v16, %v677_v22 }
 0x234   :  { %v824_v26 = vpop.f32.mrf.mxu1  ;;  %v2006_v27 = vpop.f32.mrf.mxu0 }
 0x235   :  { %v825_v29 = vadd.f32 %v824_v26, %v751_v25 }
 0x236   :  { %v2001_v30 = vpop.f32.mrf.mxu1 }
 0x237   :  { %v899_v31 = vadd.f32 %v898_v24, %v825_v29 }
 0x238   :  { %v970_v32 = vpop.f32.mrf.mxu1 }
 0x239   :  { %v971_v34 = vadd.f32 %v970_v32, %v899_v31 }
 0x23a   :  { %v2011_v35 = vpop.f32.mrf.mxu1 }
 0x23b   :  { %v974_v36 = vmax.f32 %v971_v34, 0.0 }
 0x23d   :  { %v1018_v38 = vand.u32 4294901760, %v974_v36 }
 0x23f   :  { %v1095_v39 = vsub.f32 %v974_v36, %v1018_v38  ;;  %2013 = vmatpush3.msra.mxu0 %v1018_v38 }
 0x240   :  { %2015 = vmatmul.mubr.f32.vlgmr.msra.gmra.mxu0 %v1057_v37  ;;  %2022 = vmatprep.subr.mxu0 %v2085_v7 }
 0x241   :  { %v1096_v40 = vand.u32 4294901760, %v1095_v39  ;;  %2023 = vmatpush3.msra.mxu0 %v1095_v39  ;;  %2024 = vmatprep.mubr.msk.f32.mxu0 %vm2086_vm0, %v2085_v7 }
 0x242   :  { %2032 = vmatprep.subr.mxu0 %v2085_v7 }
 0x243   :  { %v1097_v41 = vsub.f32 %v1095_v39, %v1096_v40 }
 0x244   :  { %2025 = vmatmul.mubr.f32.vlgmr.msra.gmra.mxu0 %v1054_v21 }
 0x245   :  { %2033 = vmatpush3.msra.mxu0 %v1096_v40  ;;  %v1098_v42 = vand.u32 4294901760, %v1097_v41  ;;  %2034 = vmatprep.mubr.msk.f32.mxu0 %vm2086_vm0, %v2085_v7 }
 0x246   :  { %2042 = vmatprep.subr.mxu0 %v2085_v7 }
 0x247   :  { %2018 = vmatpush3.msra.mxu1 %v1098_v42 }
 0x248   :  { %2020 = vmatmul.mubr.f32.vlgmr.msra.gmra.mxu1 %v1053_v17  ;;  %2027 = vmatprep.subr.mxu1 %v2085_v7 }
 0x249   :  { %2028 = vmatpush3.msra.mxu1 %v1018_v38  ;;  %2029 = vmatprep.mubr.msk.f32.mxu1 %vm2086_vm0, %v2085_v7 }
 0x24a   :  { %2037 = vmatprep.subr.mxu1 %v2085_v7  ;;  %2035 = vmatmul.mubr.f32.vlgmr.msra.gmra.mxu0 %v1053_v17 }
 0x24b   :  { %2044 = vmatprep.mubr.msk.f32.mxu0 %vm2086_vm0, %v2085_v7 }
 0x24c   :  { %2030 = vmatmul.mubr.f32.vlgmr.msra.gmra.mxu1 %v1055_v28 }
 0x24d   :  { %2038 = vmatpush3.msra.mxu1 %v1018_v38  ;;  %2039 = vmatprep.mubr.msk.f32.mxu1 %vm2086_vm0, %v2085_v7 }
 0x24e   :  { %2047 = vmatprep.subr.mxu1 %v2085_v7 }
 0x250   :  { %2040 = vmatmul.mubr.f32.vlgmr.msra.gmra.mxu1 %v1053_v17 }
 0x251   :  { %2049 = vmatprep.mubr.msk.f32.mxu1 %vm2086_vm0, %v2085_v7 }
 0x300   :  { %v1059_v44 = vpop.f32.mrf.mxu0 }
 0x301   :  { %v1060_v51 = vadd.f32 %v1059_v44, %v982_v49 }
 0x302   :  { %v2016_v46 = vpop.f32.mrf.mxu0 }
 0x304   :  { %v1209_v47 = vpop.f32.mrf.mxu0 }
 0x306   :  { %v2026_v50 = vpop.f32.mrf.mxu0 }
 0x308   :  { %v1135_v52 = vpop.f32.mrf.mxu1 }
 0x309   :  { %v1136_v54 = vadd.f32 %v1135_v52, %v1060_v51 }
 0x30a   :  { %v2021_v55 = vpop.f32.mrf.mxu1  ;;  %v1357_v56 = vpop.f32.mrf.mxu0 }
 0x30b   :  { %v1210_v57 = vadd.f32 %v1209_v47, %v1136_v54 }
 0x30c   :  { %v1283_v58 = vpop.f32.mrf.mxu1  ;;  %v2036_v59 = vpop.f32.mrf.mxu0 }
 0x30d   :  { %v1284_v61 = vadd.f32 %v1283_v58, %v1210_v57 }
 0x30e   :  { %v2031_v62 = vpop.f32.mrf.mxu1 }
 0x30f   :  { %v1358_v63 = vadd.f32 %v1357_v56, %v1284_v61 }
 0x310   :  { %v1429_v0 = vpop.f32.mrf.mxu1 }
 0x311   :  { %v1430_v2 = vadd.f32 %v1429_v0, %v1358_v63 }
 0x312   :  { %v2041_v3 = vpop.f32.mrf.mxu1 }
 0x313   :  { %v1433_v4 = vmax.f32 %v1430_v2, 0.0 }
 0x315   :  { %v1477_v6 = vand.u32 4294901760, %v1433_v4 }
 0x317   :  { %v1554_v8 = vsub.f32 %v1433_v4, %v1477_v6  ;;  %2043 = vmatpush3.msra.mxu0 %v1477_v6 }
 0x318   :  { %2045 = vmatmul.mubr.f32.vlgmr.msra.gmra.mxu0 %v1516_v5  ;;  %2052 = vmatprep.subr.mxu0 %v2085_v7 }
 0x319   :  { %v1555_v9 = vand.u32 4294901760, %v1554_v8  ;;  %2053 = vmatpush3.msra.mxu0 %v1554_v8  ;;  %2054 = vmatprep.mubr.msk.f32.mxu0 %vm2086_vm0, %v2085_v7 }
 0x31a   :  { %2062 = vmatprep.subr.mxu0 %v2085_v7 }
 0x31b   :  { %v1556_v10 = vsub.f32 %v1554_v8, %v1555_v9 }
 0x31c   :  { %2055 = vmatmul.mubr.f32.vlgmr.msra.gmra.mxu0 %v1513_v53 }
 0x31d   :  { %2063 = vmatpush3.msra.mxu0 %v1555_v9  ;;  %v1557_v11 = vand.u32 4294901760, %v1556_v10  ;;  %2064 = vmatprep.mubr.msk.f32.mxu0 %vm2086_vm0, %v2085_v7 }
 0x31f   :  { %2048 = vmatpush3.msra.mxu1 %v1557_v11 }
 0x320   :  { %2050 = vmatmul.mubr.f32.vlgmr.msra.gmra.mxu1 %v1512_v48  ;;  %2057 = vmatprep.subr.mxu1 %v2085_v7 }
 0x321   :  { %2058 = vmatpush3.msra.mxu1 %v1477_v6  ;;  %2059 = vmatprep.mubr.msk.f32.mxu1 %vm2086_vm0, %v2085_v7 }
 0x322   :  { %2067 = vmatprep.subr.mxu1 %v2085_v7  ;;  %2065 = vmatmul.mubr.f32.vlgmr.msra.gmra.mxu0 %v1512_v48 }
 0x324   :  { %2060 = vmatmul.mubr.f32.vlgmr.msra.gmra.mxu1 %v1514_v60 }
 0x325   :  { %2068 = vmatpush3.msra.mxu1 %v1477_v6  ;;  %2069 = vmatprep.mubr.msk.f32.mxu1 %vm2086_vm0, %v2085_v7 }
 0x328   :  { %2070 = vmatmul.mubr.f32.vlgmr.msra.gmra.mxu1 %v1512_v48 }
 0x3d8   :  { %v1518_v12 = vpop.f32.mrf.mxu0 }
 0x3d9   :  { %v1519_v17 = vadd.f32 %v1518_v12, %v1441_v15 }
 0x3da   :  { %v2046_v13 = vpop.f32.mrf.mxu0 }
 0x3dc   :  { %v1668_v14 = vpop.f32.mrf.mxu0 }
 0x3de   :  { %v2056_v16 = vpop.f32.mrf.mxu0 }
 0x3e0   :  { %v1594_v18 = vpop.f32.mrf.mxu1 }
 0x3e1   :  { %v1595_v19 = vadd.f32 %v1594_v18, %v1519_v17 }
 0x3e2   :  { %v2051_v20 = vpop.f32.mrf.mxu1  ;;  %v1816_v21 = vpop.f32.mrf.mxu0 }
 0x3e3   :  { %v1669_v22 = vadd.f32 %v1668_v14, %v1595_v19 }
 0x3e4   :  { %v1742_v23 = vpop.f32.mrf.mxu1  ;;  %v2066_v24 = vpop.f32.mrf.mxu0 }
 0x3e5   :  { %v1743_v25 = vadd.f32 %v1742_v23, %v1669_v22 }
 0x3e6   :  { %v2061_v26 = vpop.f32.mrf.mxu1 }
 0x3e7   :  { %v1817_v27 = vadd.f32 %v1816_v21, %v1743_v25 }
 0x3e8   :  { %v1888_v28 = vpop.f32.mrf.mxu1 }
 0x3e9   :  { %v1889_v29 = vadd.f32 %v1888_v28, %v1817_v27 }
 0x3ea   :  { %v2071_v7 = vpop.f32.mrf.mxu1 }
 0x3eb   :  { %1892 = vst [vmem:[%s2228_s4] sm:$0x1] %v1889_v29 }

</bundles_post_ra>
